<compile_context>
chip_gen: v7x
topology: tpu7x:2x2x1
jax: 0.10.0
libtpu: 0.0.40
codegen_flags: <defaults>
</compile_context>

<pallas_src>
import functools

import jax
import jax.numpy as jnp
from jax.experimental import pallas as pl
from jax.experimental.pallas import tpu as pltpu


def _round_up(x: int, m: int) -> int:
    return (x + m - 1) // m * m


def channel_mix_kernel(x_ref, mix_k_ref, mix_r_ref, wk_ref, wv_ref, wr_ref,
                       o_ref, *, t_pad: int):
    # x_ref: (rows_blk, d_pad) in the activation's native dtype; rows are laid
    # out as consecutive [batch, time] slabs of length t_pad.
    x = x_ref[...].astype(jnp.float32)

    # time_shift == ZeroPad2d((0, 0, 1, -1)): x_sh[t] = x[t-1], row 0 zeroed.
    # Sublane roll + zeroing every row with (row % t_pad == 0) reproduces it
    # exactly and never leaks across folded-sequence boundaries.
    x_sh = pltpu.roll(x, shift=1, axis=0)
    # Cheap mask: a (rows, 1) column broadcast by the where (VALU-light, helps
    # v5e); bitwise AND when t_pad is a power of two.
    row = jax.lax.broadcasted_iota(jnp.int32, (x.shape[0], 1), 0)
    if t_pad & (t_pad - 1) == 0:
        is_first = (row & (t_pad - 1)) == 0
    else:
        is_first = (row % t_pad) == 0
    x_sh = jnp.where(is_first, 0.0, x_sh)

    delta = x - x_sh                        # shared by both blends
    mix_k = mix_k_ref[...]                  # (1, d_pad) f32, broadcasts on rows
    mix_r = mix_r_ref[...]

    # Blend in f32; downcast only the MXU operands to bf16 (f32 accumulation).
    k_in = (x_sh + mix_k * delta).astype(jnp.bfloat16)
    r_in = (x_sh + mix_r * delta).astype(jnp.bfloat16)

    k = jnp.dot(k_in, wk_ref[...], preferred_element_type=jnp.float32)
    k = jnp.square(jnp.maximum(k, 0.0))
    # NOTE: k is cast back to bf16 for the Wv matmul (MXU-native throughput);
    # keep it f32 if tighter parity with the f32 reference is ever required.
    v = jnp.dot(k.astype(jnp.bfloat16), wv_ref[...],
                preferred_element_type=jnp.float32)
    r_logit = jnp.dot(r_in, wr_ref[...], preferred_element_type=jnp.float32)
    # sigmoid(x) = 1 / (1 + exp(-x)); exp + approximate reciprocal both live
    # on the EUP slot, leaving the VPU free.
    r = pl.reciprocal(1.0 + jnp.exp(-r_logit), approx=True)

    o_ref[...] = (r * v).astype(o_ref.dtype)


def prepare_channel_mixing_params(mix_k, mix_r, w_key, w_value, w_receptance):
    """Pad / transpose / cast the static parameters once.

    Hoisted out of the per-call path: redoing three full d x d transposes +
    bf16 casts every forward is pure HBM overhead for static weights.
    """
    d = w_key.shape[0]
    d_pad = _round_up(d, 128)            # lane-dense channel dim

    def pad_vec(v):
        out = jnp.zeros((1, d_pad), jnp.float32)
        return out.at[0, :d].set(v.reshape(-1).astype(jnp.float32))

    def pad_w_t(w):
        # Store W^T so the kernel computes x @ W^T with a plain dot; bf16 is
        # MXU-native and halves weight DMA / VMEM bytes.
        out = jnp.zeros((d_pad, d_pad), jnp.bfloat16)
        return out.at[:d, :d].set(w.T.astype(jnp.bfloat16))

    return {
        "d": d,
        "d_pad": d_pad,
        "mix_k": pad_vec(mix_k),
        "mix_r": pad_vec(mix_r),
        "wk_t": pad_w_t(w_key),
        "wv_t": pad_w_t(w_value),
        "wr_t": pad_w_t(w_receptance),
    }


def channel_mixing(x, params, *, target_rows=None):
    """RWKV ChannelMixing forward.

    x: (B, T, d) activations (any float dtype; kept native over HBM).
    params: output of prepare_channel_mixing_params.
    """
    B, T, d = x.shape
    assert d == params["d"], "params were prepared for a different dim"
    d_pad = params["d_pad"]
    t_pad = _round_up(T, 8)              # sublane-aligned time axis
    x_bytes = x.dtype.itemsize

    # ---- generation-aware VMEM budget / tile size ------------------------
    try:
        vmem_cap = int(pltpu.get_tpu_info().vmem_capacity_bytes)
    except Exception:
        vmem_cap = 64 << 20              # conservative (v7x per-TC size)
    vmem_budget = int(vmem_cap * 0.82)   # leave compiler / spill headroom

    if target_rows is None:
        # 128 MiB-VMEM chips (v5e/v6e) can afford bigger M tiles than v7x.
        target_rows = 1024 if vmem_cap >= (96 << 20) else 512

    def vmem_need(bb):
        rows = bb * t_pad
        return (2 * rows * d_pad * x_bytes      # x blocks (double-buffered)
                + 2 * rows * d_pad * x_bytes    # out blocks (double-buffered)
                + 3 * d_pad * d_pad * 2         # single-buffered bf16 weights
                + 6 * rows * d_pad * 4          # f32 elementwise temporaries
                + (2 << 20))                    # misc slack

    # Fold several sequences into one M tile so each grid step feeds the MXU
    # >= target_rows rows and amortizes the ~0.35us per-step overhead.
    b_blk = max(1, min(B, -(-target_rows // t_pad)))
    # Keep >= 2 grid steps when possible so the "parallel" axis can shard
    # across v7x's two TensorCores (negligible cost on 1-TC v5e/v6e).
    if B >= 2:
        b_blk = min(b_blk, -(-B // 2))
    # Shrink the fold until the resident working set fits the VMEM budget.
    while b_blk > 1 and vmem_need(b_blk) > vmem_budget:
        b_blk = (b_blk + 1) // 2
    # TODO(synk): when the three bf16 weights alone exceed the budget
    # (d_pad >= 4096 on v7x), add an "arbitrary" N-tiling grid axis over the
    # Wv^T/Wr^T output columns and cache k = relu(x@Wk^T)^2 in VMEM scratch.
    # TODO(synk): for very long T with small B, split t_pad across grid steps
    # with a 1-row carry instead of only folding batches.

    b_padded = _round_up(B, b_blk)
    rows_blk = b_blk * t_pad
    total_rows = b_padded * t_pad
    grid = (b_padded // b_blk,)

    # ---- activation layout (fast path: skip the padding copy if aligned) --
    needs_pad = (d != d_pad) or (T != t_pad) or (B != b_padded)
    if needs_pad:
        # Padded lanes/rows are zero and provably contribute zero to real
        # outputs; they are sliced off at the end.
        xp = jnp.zeros((b_padded, t_pad, d_pad), x.dtype)
        xp = xp.at[:B, :T, :d].set(x)
        x2 = xp.reshape(total_rows, d_pad)
    else:
        x2 = x.reshape(total_rows, d_pad)

    cost = pl.CostEstimate(
        flops=3 * 2 * total_rows * d_pad * d_pad,
        transcendentals=total_rows * d_pad,              # exp for sigmoid
        bytes_accessed=(2 * total_rows * d_pad * x_bytes
                        + 3 * d_pad * d_pad * 2),
    )

    vmem_limit = int(min(max(vmem_need(b_blk), 32 << 20), vmem_budget))

    # Constant-index blocks stay resident; single-buffer them (Buffered(1))
    # instead of the default double-buffering to halve weight VMEM.
    resident = dict(pipeline_mode=pl.Buffered(1))

    out2 = pl.pallas_call(
        functools.partial(channel_mix_kernel, t_pad=t_pad),
        out_shape=jax.ShapeDtypeStruct((total_rows, d_pad), x.dtype),
        grid_spec=pltpu.PrefetchScalarGridSpec(
            num_scalar_prefetch=0,
            grid=grid,
            in_specs=[
                pl.BlockSpec((rows_blk, d_pad), lambda i: (i, 0)),           # x
                pl.BlockSpec((1, d_pad), lambda i: (0, 0), **resident),      # mix_k
                pl.BlockSpec((1, d_pad), lambda i: (0, 0), **resident),      # mix_r
                pl.BlockSpec((d_pad, d_pad), lambda i: (0, 0), **resident),  # Wk^T
                pl.BlockSpec((d_pad, d_pad), lambda i: (0, 0), **resident),  # Wv^T
                pl.BlockSpec((d_pad, d_pad), lambda i: (0, 0), **resident),  # Wr^T
            ],
            out_specs=pl.BlockSpec((rows_blk, d_pad), lambda i: (i, 0)),
        ),
        compiler_params=pltpu.CompilerParams(
            dimension_semantics=("parallel",),
            vmem_limit_bytes=vmem_limit,
        ),
        cost_estimate=cost,
    )(x2, params["mix_k"], params["mix_r"],
      params["wk_t"], params["wv_t"], params["wr_t"])

    if needs_pad:
        return out2.reshape(b_padded, t_pad, d_pad)[:B, :T, :d]
    return out2.reshape(B, T, d)


def channel_mixing_ref(x, mix_k, mix_r, w_key, w_value, w_receptance,
                       mxu_dtype=None):
    """Pure-JAX reference replicating the PyTorch forward.

    mxu_dtype=jnp.bfloat16 mimics the kernel's matmul operand precision
    (f32 accumulation) for a tight structural check.
    """
    B, T, d = x.shape
    x_sh = jnp.concatenate([jnp.zeros((B, 1, d), x.dtype), x[:, :-1, :]],
                           axis=1)
    mk = mix_k.reshape(1, 1, d)
    mr = mix_r.reshape(1, 1, d)
    k_in = x * mk + x_sh * (1.0 - mk)
    r_in = x * mr + x_sh * (1.0 - mr)

    def mm(a, w):
        w_t = w.T
        if mxu_dtype is not None:
            a = a.astype(mxu_dtype)
            w_t = w_t.astype(mxu_dtype)
        return jnp.dot(a, w_t, preferred_element_type=jnp.float32)

    k = jnp.square(jnp.maximum(mm(k_in, w_key), 0.0))
    v = mm(k, w_value)
    r = jax.nn.sigmoid(mm(r_in, w_receptance))
    return r * v


if __name__ == "__main__":
    B, T, d = 2, 8, 32
    key = jax.random.PRNGKey(0)
    kx, k1, k2, k3, k4, k5 = jax.random.split(key, 6)

    x = jax.random.normal(kx, (B, T, d), dtype=jnp.float32)
    # Parameter shapes match the module (__init__ uses ones; random here so
    # the time-shift path is actually exercised).
    mix_k = jax.random.uniform(k1, (1, 1, d), dtype=jnp.float32)
    mix_r = jax.random.uniform(k2, (1, 1, d), dtype=jnp.float32)
    scale = 1.0 / jnp.sqrt(d)
    w_key = jax.random.normal(k3, (d, d), dtype=jnp.float32) * scale
    w_value = jax.random.normal(k4, (d, d), dtype=jnp.float32) * scale
    w_receptance = jax.random.normal(k5, (d, d), dtype=jnp.float32) * scale

    # Weight preprocessing hoisted out of the per-call path.
    params = prepare_channel_mixing_params(mix_k, mix_r, w_key, w_value,
                                           w_receptance)

    out = channel_mixing(x, params)
    out = jax.block_until_ready(out)
    assert out.shape == (B, T, d)
    assert out.dtype == x.dtype

    # Structural check against a reference with the same bf16 MXU operand
    # precision (f32 accumulation) — should match closely.
    ref_bf16 = channel_mixing_ref(x, mix_k, mix_r, w_key, w_value,
                                  w_receptance, mxu_dtype=jnp.bfloat16)
    assert jnp.allclose(out, ref_bf16, atol=1e-2, rtol=1e-2), \
        "mismatch vs bf16-matched reference"

    # Proximity check against the full-f32 PyTorch-equivalent reference
    # (looser tolerance because the kernel uses bf16 matmul operands).
    ref_f32 = channel_mixing_ref(x, mix_k, mix_r, w_key, w_value,
                                 w_receptance)
    assert jnp.allclose(out, ref_f32, atol=1e-1, rtol=1e-1), \
        "mismatch vs f32 reference"

    print("KERNEL_OK")
</pallas_src>

<mosaic_0001>
module attributes {stable_mosaic.version = 11 : i64} {
  func.func @channel_mix_kernel(%arg0: i32, %arg1: memref<8x128xf32, #tpu.memory_space<vmem>>, %arg2: memref<1x128xf32, #tpu.memory_space<vmem>>, %arg3: memref<1x128xf32, #tpu.memory_space<vmem>>, %arg4: memref<128x128xbf16, #tpu.memory_space<vmem>>, %arg5: memref<128x128xbf16, #tpu.memory_space<vmem>>, %arg6: memref<128x128xbf16, #tpu.memory_space<vmem>>, %arg7: memref<8x128xf32, #tpu.memory_space<vmem>>) attributes {dimension_semantics = [#tpu.dimension_semantics<parallel>], iteration_bounds = array<i64: 2>, scalar_prefetch = 0 : i64, scratch_operands = 0 : i64, tpu.core_type = #tpu.core_type<tc>, window_params = [{transform_indices = @transform_0, window_bounds = array<i64: 8, 128>}, {pipeline_mode = #tpu.pipeline_mode<synchronous>, transform_indices = @transform_1, window_bounds = array<i64: 1, 128>}, {pipeline_mode = #tpu.pipeline_mode<synchronous>, transform_indices = @transform_2, window_bounds = array<i64: 1, 128>}, {pipeline_mode = #tpu.pipeline_mode<synchronous>, transform_indices = @transform_3, window_bounds = array<i64: 128, 128>}, {pipeline_mode = #tpu.pipeline_mode<synchronous>, transform_indices = @transform_4, window_bounds = array<i64: 128, 128>}, {pipeline_mode = #tpu.pipeline_mode<synchronous>, transform_indices = @transform_5, window_bounds = array<i64: 128, 128>}, {transform_indices = @transform_6, window_bounds = array<i64: 8, 128>}]} {
    %c0 = arith.constant 0 : index
    %c0_0 = arith.constant 0 : index
    %0 = vector.load %arg1[%c0, %c0_0] : memref<8x128xf32, #tpu.memory_space<vmem>>, vector<8x128xf32>
    %c1_i32 = arith.constant 1 : i32
    %1 = tpu.dynamic_rotate %0 by %c1_i32 dim 0 : vector<8x128xf32>, i32 -> vector<8x128xf32>
    %2 = tpu.iota {dimensions = array<i32: 0>} : vector<8x1xi32>
    %c7_i32 = arith.constant 7 : i32
    %3 = vector.broadcast %c7_i32 : i32 to vector<8x1xi32>
    %4 = arith.andi %2, %3 : vector<8x1xi32>
    %c0_i32 = arith.constant 0 : i32
    %5 = vector.broadcast %c0_i32 : i32 to vector<8x1xi32>
    %6 = arith.cmpi eq, %4, %5 : vector<8x1xi32>
    %cst = arith.constant 0.000000e+00 : f32
    %7 = vector.shape_cast %6 : vector<8x1xi1> to vector<8x1xi1>
    %8 = vector.broadcast %7 : vector<8x1xi1> to vector<8x128xi1>
    %9 = vector.broadcast %cst : f32 to vector<8x128xf32>
    %10 = arith.select %8, %9, %1 : vector<8x128xi1>, vector<8x128xf32>
    %11 = arith.subf %0, %10 : vector<8x128xf32>
    %c0_1 = arith.constant 0 : index
    %c0_2 = arith.constant 0 : index
    %12 = vector.load %arg2[%c0_1, %c0_2] : memref<1x128xf32, #tpu.memory_space<vmem>>, vector<1x128xf32>
    %c0_3 = arith.constant 0 : index
    %c0_4 = arith.constant 0 : index
    %13 = vector.load %arg3[%c0_3, %c0_4] : memref<1x128xf32, #tpu.memory_space<vmem>>, vector<1x128xf32>
    %14 = vector.broadcast %12 : vector<1x128xf32> to vector<8x128xf32>
    %15 = arith.mulf %14, %11 : vector<8x128xf32>
    %16 = arith.addf %10, %15 : vector<8x128xf32>
    %17 = arith.truncf %16 : vector<8x128xf32> to vector<8x128xbf16>
    %18 = vector.broadcast %13 : vector<1x128xf32> to vector<8x128xf32>
    %19 = arith.mulf %18, %11 : vector<8x128xf32>
    %20 = arith.addf %10, %19 : vector<8x128xf32>
    %21 = arith.truncf %20 : vector<8x128xf32> to vector<8x128xbf16>
    %c0_5 = arith.constant 0 : index
    %c0_6 = arith.constant 0 : index
    %22 = vector.load %arg4[%c0_5, %c0_6] : memref<128x128xbf16, #tpu.memory_space<vmem>>, vector<128x128xbf16>
    %cst_7 = arith.constant dense<0.000000e+00> : vector<8x128xf32>
    %23 = tpu.matmul %17, %22, %cst_7 {dimension_numbers = #tpu.dot_dimension_numbers<[1], [0], [0], [1], [0, 0, 1, 1], [], []>} : vector<8x128xbf16>, vector<128x128xbf16>, vector<8x128xf32> -> vector<8x128xf32>
    %cst_8 = arith.constant 0.000000e+00 : f32
    %24 = vector.broadcast %cst_8 : f32 to vector<8x128xf32>
    %25 = arith.maximumf %23, %24 : vector<8x128xf32>
    %26 = arith.mulf %25, %25 : vector<8x128xf32>
    %27 = arith.truncf %26 : vector<8x128xf32> to vector<8x128xbf16>
    %c0_9 = arith.constant 0 : index
    %c0_10 = arith.constant 0 : index
    %28 = vector.load %arg5[%c0_9, %c0_10] : memref<128x128xbf16, #tpu.memory_space<vmem>>, vector<128x128xbf16>
    %cst_11 = arith.constant dense<0.000000e+00> : vector<8x128xf32>
    %29 = tpu.matmul %27, %28, %cst_11 {dimension_numbers = #tpu.dot_dimension_numbers<[1], [0], [0], [1], [0, 0, 1, 1], [], []>} : vector<8x128xbf16>, vector<128x128xbf16>, vector<8x128xf32> -> vector<8x128xf32>
    %c0_12 = arith.constant 0 : index
    %c0_13 = arith.constant 0 : index
    %30 = vector.load %arg6[%c0_12, %c0_13] : memref<128x128xbf16, #tpu.memory_space<vmem>>, vector<128x128xbf16>
    %cst_14 = arith.constant dense<0.000000e+00> : vector<8x128xf32>
    %31 = tpu.matmul %21, %30, %cst_14 {dimension_numbers = #tpu.dot_dimension_numbers<[1], [0], [0], [1], [0, 0, 1, 1], [], []>} : vector<8x128xbf16>, vector<128x128xbf16>, vector<8x128xf32> -> vector<8x128xf32>
    %cst_15 = arith.constant 0.000000e+00 : f32
    %32 = vector.broadcast %cst_15 : f32 to vector<8x128xf32>
    %33 = arith.subf %32, %31 : vector<8x128xf32>
    %34 = math.exp %33 : vector<8x128xf32>
    %cst_16 = arith.constant 1.000000e+00 : f32
    %35 = vector.broadcast %cst_16 : f32 to vector<8x128xf32>
    %36 = arith.addf %35, %34 : vector<8x128xf32>
    %37 = tpu.reciprocal %36 {approx = true} : vector<8x128xf32> -> vector<8x128xf32>
    %38 = arith.mulf %37, %29 : vector<8x128xf32>
    %c0_17 = arith.constant 0 : index
    %c0_18 = arith.constant 0 : index
    %39 = vector.load %arg7[%c0_17, %c0_18] : memref<8x128xf32, #tpu.memory_space<vmem>>, vector<8x128xf32>
    tpu.vector_store %arg7[%c0_17, %c0_18], %38 {strides = array<i32>} : memref<8x128xf32, #tpu.memory_space<vmem>>, vector<8x128xf32>,
    return
  }
  func.func @transform_0(%arg0: i32) -> (i32, i32) {
    %c0_i32 = arith.constant 0 : i32
    %c0_i32_0 = arith.constant 0 : i32
    return %arg0, %c0_i32 : i32, i32
  }
  func.func @transform_1(%arg0: i32) -> (i32, i32) {
    %c0_i32 = arith.constant 0 : i32
    %c0_i32_0 = arith.constant 0 : i32
    %c0_i32_1 = arith.constant 0 : i32
    return %c0_i32, %c0_i32_0 : i32, i32
  }
  func.func @transform_2(%arg0: i32) -> (i32, i32) {
    %c0_i32 = arith.constant 0 : i32
    %c0_i32_0 = arith.constant 0 : i32
    %c0_i32_1 = arith.constant 0 : i32
    return %c0_i32, %c0_i32_0 : i32, i32
  }
  func.func @transform_3(%arg0: i32) -> (i32, i32) {
    %c0_i32 = arith.constant 0 : i32
    %c0_i32_0 = arith.constant 0 : i32
    %c0_i32_1 = arith.constant 0 : i32
    return %c0_i32, %c0_i32_0 : i32, i32
  }
  func.func @transform_4(%arg0: i32) -> (i32, i32) {
    %c0_i32 = arith.constant 0 : i32
    %c0_i32_0 = arith.constant 0 : i32
    %c0_i32_1 = arith.constant 0 : i32
    return %c0_i32, %c0_i32_0 : i32, i32
  }
  func.func @transform_5(%arg0: i32) -> (i32, i32) {
    %c0_i32 = arith.constant 0 : i32
    %c0_i32_0 = arith.constant 0 : i32
    %c0_i32_1 = arith.constant 0 : i32
    return %c0_i32, %c0_i32_0 : i32, i32
  }
  func.func @transform_6(%arg0: i32) -> (i32, i32) {
    %c0_i32 = arith.constant 0 : i32
    %c0_i32_0 = arith.constant 0 : i32
    return %arg0, %c0_i32 : i32, i32
  }
}

</mosaic_0001>

<bundles_post_ra>
// kernel: tpu_custom_call.1
= control target key start
LH: loop header
LB: loop body
LE: loop exit
PB: predicated region body
PF: predicated region fallthrough
CT: control target
= control target key end

     0   :  { %11 = vsyncpa [#allocation3], 0  ;;  %s1554_s0 = inlined_call_operand.hbm [shape: f32[16,128], index: 0, kind: input, shape index: {}]   ;;  %s1555_s1 = inlined_call_operand.vmem [shape: f32[1,128], index: 1, kind: input, shape index: {}]   ;;  %s1556_s2 = inlined_call_operand.vmem [shape: f32[1,128], index: 2, kind: input, shape index: {}]   ;;  %s1557_s3 = inlined_call_operand.hbm [shape: bf16[128,128], index: 3, kind: input, shape index: {}]   ;;  %s1558_s4 = inlined_call_operand.hbm [shape: bf16[128,128], index: 4, kind: input, shape index: {}]   ;;  %s1559_s5 = inlined_call_operand.hbm [shape: bf16[128,128], index: 5, kind: input, shape index: {}]   ;;  %s1560_s6 = inlined_call_operand.hbm [shape: f32[16,128], index: 6, kind: output, shape index: {}]  }
   0x1   :  { %13 = vsyncpa [#allocation3 + $0x1], 0 }
   0x2   :  { %14 = vsyncpa [#allocation6], 0 }
   0x3   :  { %15 = vsyncpa [#allocation9], 0 }
   0x4   :  { %16 = vsyncpa [#allocation4], 0 }
   0x5   :  { %18 = vsyncpa [#allocation4 + $0x1], 0  ;;  %s1251_s21 = smov 0   ;;  %s1253_s22 = smov 0  }
   0x6   :  { %s1255_s23 = smov 0   ;;  %s1257_s24 = smov 0  }
   0x7 LB: > { %s1272_s25 = sadd.s32 4294967295, %s1205_s24   ;;  %s777_s26 = sadd.s32 4294967294, %s1205_s24   ;;  %s1205_s24 = sphi %s1257_s24, %s1583_s24   ;;  %s1201_s23 = sphi %s1255_s23, %s1582_s23   ;;  %s1197_s22 = sphi %s1253_s22, %s1581_s22   ;;  %s1193_s21 = sphi %s1251_s21, %s1580_s21  }
   0x8   : > { %p44_p0 = scmp.ne.s32.totalorder %s1197_s22, %s1193_s21  ;;  %p1561_p1 = scmp.eq.s32.totalorder %s1272_s25, 0 }
   0x9   : > { %p179_p3 = scmp.eq.s32.totalorder %s777_s26, 1  ;;  %p778_p5 = scmp.ge.s32.totalorder %s1205_s24, 1 }
   0xa   : > { %p1281_p4 = por %p1561_p1, %p44_p0  ;;  %p186_p7 = scmp.lt.s32.totalorder %s1205_s24, 3 }
   0xb   : > { %p1286_p6 = por %p179_p3, %p44_p0  ;;  %s1207_s30 = smov [#allocation5]  }
   0xc   : > { %s1564_s27 = scalar_select %p1281_p4, 1, 0 }
   0xd   : > { %s1565_s28 = scalar_select %p1286_p6, 1, 0 }
   0xe   : > { %p1291_p8 = pnand %p778_p5, %p186_p7  ;;  %s204_s7 = sshll.u32 %s1207_s30, 4  ;;  %s1295_s7 = int_to_ptr.vmem [resolvable:$true] %s204_s7 }
   0xf   : > { %s1208_s9 = smov [#allocation7]   ;;  %s1209_s11 = smov [#allocation8]  }
  0x10   : > { %s1566_s29 = scalar_select %p1291_p8, 1, 0 }
  0x11   : > { %p924_p9 = pneg %p1291_p8  ;;  %s217_s10 = sshll.u32 %s1208_s9, 4  ;;  %s1306_s10 = int_to_ptr.vmem [resolvable:$true] %s217_s10 }
  0x12   : > { %s1308_s12 = sshll.u32 %s1209_s11, 4  ;;  %s1017_s15 = scalar_lea.hbm %s1557_s3, 1024  ;;  %s231_s12 = int_to_ptr.vmem [resolvable:$true] %s1308_s12 }
  0x13   : > { %p1302_p11 = pnand %p924_p9, %p1561_p1  ;;  %p1018_p12 = scmp.ne.s32.totalorder %s1557_s3, %s1017_s15 }
  0x14   : > { %p1024_p5 = scmp.lt.u32.totalorder %s1017_s15, %s1557_s3 }
  0x15   : > { %p1318_p13 = pneg %p1302_p11 }
  0x17   : > { %p1020_p0 = pnand %p1318_p13, %p1018_p12 }
  0x19   : > { %p1021_p3 = pneg %p1020_p0 }
  0x1b   : > { %p1026_p7 = pnand %p1024_p5, %p1021_p3 }
  0x1d   : > { %1029 = shalt.err (!%p1026_p7)
}
  0x1e   : > { %s1030_s26 = scalar_lea.vmem %s1295_s7, 1024  ;;  %p1038_p2 = scmp.lt.s32.totalorder %s1295_s7, %s1295_s7 }
  0x1f   : > { %p1031_p9 = scmp.ne.s32.totalorder %s1295_s7, %s1030_s26  ;;  %p1039_p6 = scmp.lt.s32.totalorder %s1030_s26, %s1030_s26 }
  0x21   : > { %p1033_p10 = pnand %p1031_p9, %p1318_p13  ;;  %p1040_p12 = por %p1039_p6, %p1038_p2 }
  0x23   : > { %p1034_p1 = pneg %p1033_p10 }
  0x25   : > { %p1041_p0 = pnand %p1040_p12, %p1034_p1 }
  0x27   : > { %1044 = shalt.err (!%p1041_p0)
}
  0x28   : > { %s1210_s30 = smov 64   ;;  %s1211_s9 = smov 4  }
  0x29   : > { %927 = dma.hbm_to_vmem [thread:$0]  (!%p1302_p11), %s1557_s3, 1024, %s1295_s7, [#allocation6], %s1210_s30, %s1210_s30, %s1211_s9  }
  0x2a   : > { %s1045_s16 = scalar_lea.hbm %s1558_s4, 1024 }
  0x2b   : > { %p1046_p1 = scmp.ne.s32.totalorder %s1558_s4, %s1045_s16  ;;  %p1052_p10 = scmp.lt.u32.totalorder %s1045_s16, %s1558_s4 }
  0x2d   : > { %p1048_p2 = pnand %p1046_p1, %p1318_p13 }
  0x2f   : > { %p1049_p6 = pneg %p1048_p2 }
  0x31   : > { %p1054_p3 = pnand %p1052_p10, %p1049_p6 }
  0x33   : > { %1057 = shalt.err (!%p1054_p3)
}
  0x34   : > { %s1058_s7 = scalar_lea.vmem %s1306_s10, 1024  ;;  %p1066_p12 = scmp.lt.s32.totalorder %s1306_s10, %s1306_s10 }
  0x35   : > { %p1059_p5 = scmp.ne.s32.totalorder %s1306_s10, %s1058_s7  ;;  %p1067_p0 = scmp.lt.s32.totalorder %s1058_s7, %s1058_s7 }
  0x37   : > { %p1061_p7 = pnand %p1059_p5, %p1318_p13  ;;  %p1068_p1 = por %p1067_p0, %p1066_p12 }
  0x39   : > { %p1062_p9 = pneg %p1061_p7 }
  0x3b   : > { %p1069_p2 = pnand %p1068_p1, %p1062_p9 }
  0x3d   : > { %1072 = shalt.err (!%p1069_p2)
}
  0x3e   : > { %930 = dma.hbm_to_vmem [thread:$0]  (!%p1302_p11), %s1558_s4, 1024, %s1306_s10, [#allocation6], %s1210_s30, %s1210_s30, %s1211_s9  }
  0x3f   : > { %s1073_s16 = scalar_lea.hbm %s1559_s5, 1024 }
  0x40   : > { %p1074_p6 = scmp.ne.s32.totalorder %s1559_s5, %s1073_s16  ;;  %p1080_p5 = scmp.lt.u32.totalorder %s1073_s16, %s1559_s5 }
  0x42   : > { %p1076_p10 = pnand %p1074_p6, %p1318_p13 }
  0x44   : > { %p1077_p3 = pneg %p1076_p10 }
  0x46   : > { %p1082_p7 = pnand %p1080_p5, %p1077_p3 }
  0x48   : > { %1085 = shalt.err (!%p1082_p7)
}
  0x49   : > { %s1086_s7 = scalar_lea.vmem %s231_s12, 1024  ;;  %p1094_p1 = scmp.lt.s32.totalorder %s231_s12, %s231_s12 }
  0x4a   : > { %p1087_p9 = scmp.ne.s32.totalorder %s231_s12, %s1086_s7  ;;  %p1095_p2 = scmp.lt.s32.totalorder %s1086_s7, %s1086_s7 }
  0x4c   : > { %p1089_p12 = pnand %p1087_p9, %p1318_p13  ;;  %p1096_p4 = por %p1095_p2, %p1094_p1 }
  0x4e   : > { %p1090_p0 = pneg %p1089_p12 }
  0x50   : > { %p1097_p8 = pnand %p1096_p4, %p1090_p0 }
  0x52   : > { %1100 = shalt.err (!%p1097_p8)
}
  0x53   : > { %933 = dma.hbm_to_vmem [thread:$0]  (!%p1302_p11), %s1559_s5, 1024, %s231_s12, [#allocation9], %s1210_s30, %s1210_s30, %s1211_s9  }
  0x54   : > { %s1391_s18 = sadd.s32 1, %s1205_s24   ;;  %s31_s13 = sadd.s32 1, %s1201_s23 }
  0x55   : > { %s28_s8 = ssub.s32 %s1205_s24, %s1391_s18  ;;  %p38_p8 = scmp.ne.s32.totalorder %s1201_s23, %s1197_s22 }
  0x56   : > { %p29_p4 = scmp.eq.s32.totalorder %s28_s8, 0  ;;  %p39_p13 = scmp.eq.s32.totalorder %s1205_s24, 0 }
  0x57   : > { %p945_p6 = scmp.lt.s32.totalorder %s1205_s24, 2  ;;  %p1569_p3 = scmp.eq.s32.totalorder %s1272_s25, 1 }
  0x58   : > { %s1401_s14 = scalar_select %p29_p4, %s1201_s23, %s31_s13  }
  0x59   : > { %p40_p10 = por %p39_p13, %p38_p8  ;;  %p1405_p5 = por %p1569_p3, %p38_p8 }
  0x5a   : > { %s244_s16 = sand.u32 1, %s1201_s23   ;;  %s784_s17 = sshll.u32 %s1205_s24, 7 }
  0x5b   : > { %s783_s12 = sshll.u32 %s244_s16, 3  ;;  %s1414_s19 = scalar_lea.hbm %s1554_s0, %s784_s17 }
  0x5c   : > { %s248_s20 = scalar_lea.vmem [#allocation2], %s783_s12  ;;  %p1416_p11 = pnand %p945_p6, %p40_p10 }
  0x5d   : > { %s255_s26 = sshll.u32 %s248_s20, 4  ;;  %s245_s10 = scalar_lea.sflag [#allocation3], %s244_s16  ;;  %s1420_s26 = int_to_ptr.vmem [resolvable:$true] %s255_s26 }
  0x5e   : > { %s1101_s11 = scalar_lea.hbm %s1414_s19, 128  ;;  %p1103_p9 = pneg %p1416_p11 }
  0x5f   : > { %p1102_p7 = scmp.ne.s32.totalorder %s1414_s19, %s1101_s11  ;;  %s1106_s17 = scalar_lea.hbm %s1554_s0, 256 }
  0x60   : > { %p1107_p1 = scmp.lt.u32.totalorder %s1414_s19, %s1554_s0  ;;  %p1108_p2 = scmp.lt.u32.totalorder %s1106_s17, %s1101_s11 }
  0x61   : > { %p1104_p12 = pnand %p1103_p9, %p1102_p7  ;;  %p1110_p8 = scmp.lt.u32.totalorder %s1101_s11, %s1414_s19 }
  0x62   : > { %p1109_p4 = por %p1108_p2, %p1107_p1 }
  0x63   : > { %p1105_p0 = pneg %p1104_p12 }
  0x64   : > { %p1111_p13 = por %p1110_p8, %p1109_p4 }
  0x66   : > { %p1112_p6 = pnand %p1111_p13, %p1105_p0 }
  0x68   : > { %1115 = shalt.err (!%p1112_p6)
}
  0x69   : > { %s1116_s16 = scalar_lea.vmem %s1420_s26, 128  ;;  %s1212_s9 = smov [#allocation2]  }
  0x6a   : > { %p1117_p10 = scmp.ne.s32.totalorder %s1420_s26, %s1116_s16  ;;  %s1121_s20 = sshll.u32 %s1212_s9, 4  ;;  %s1122_s20 = int_to_ptr.vmem [resolvable:$false] %s1121_s20 }
  0x6b   : > { %s1123_s8 = scalar_lea.vmem %s1122_s20, 256  ;;  %p1124_p12 = scmp.lt.s32.totalorder %s1420_s26, %s1122_s20 }
  0x6c   : > { %p1119_p3 = pnand %p1117_p10, %p1103_p9  ;;  %p1125_p1 = scmp.lt.s32.totalorder %s1123_s8, %s1116_s16 }
  0x6e   : > { %p1120_p7 = pneg %p1119_p3  ;;  %p1126_p2 = por %p1125_p1, %p1124_p12 }
  0x70   : > { %p1127_p4 = pnand %p1126_p2, %p1120_p7 }
  0x72   : > { %1130 = shalt.err (!%p1127_p4)
}
  0x73   : > { %937 = dma.hbm_to_vmem [thread:$0]  (!%p1416_p11), %s1414_s19, 128, %s1420_s26, %s245_s10  }
  0x74   : > { %p1572_p0 = scmp.ne.s32.totalorder %s1566_s29, 0 }
  0x75   : > { %s1450_s11 = sand.u32 (!%p1572_p0), 1, %s1197_s22   ;;  %p1573_p9 = scmp.ne.s32.totalorder (!%p1572_p0), %s1564_s27, 0 }
  0x76   : > { %264 = sbr.rel (%p1572_p0) target bundleno = 613 (0x265), region = 44  ;;  %s786_s13 = sshll.u32 (!%p1572_p0), %s1450_s11, 3 }
  0x77   : > { %s267_s17 = scalar_lea.sflag (!%p1572_p0), [#allocation3], %s1450_s11  ;;  %s270_s12 = scalar_lea.vmem (!%p1572_p0), [#allocation2], %s786_s13 }
  0x7d   : > { %1176 = dma.done.wait (%p1573_p9), %s267_s17, 128  }
  0x7e   : > { %1178 = vsyncadd (%p1573_p9), %s267_s17, 4294967168  ;;  %p1574_p11 = scmp.eq.s32.totalorder %s1272_s25, 0 }
  0x80   : > { %1180 = dma.done.wait (%p1574_p11), [#allocation6], 2048   ;;  %p1575_p8 = pmov %p1574_p11 }
  0x82   : > { %1182 = vsyncadd (%p1575_p8), [#allocation6], 4294965248  ;;  %p1576_p13 = pmov %p1575_p8 }
  0x83   : > { %p1577_p6 = pmov %p1575_p8 }
  0x84   : > { %1184 = dma.done.wait (%p1576_p13), [#allocation9], 1024  }
  0x85   : > { %1186 = vsyncadd (%p1577_p6), [#allocation9], 4294966272  ;;  %v1213_v0 = vmov 0.0   ;;  %vm1214_vm0 = vmmov 0   ;;  %v314_v1 = vlaneseq  ;;  %v989_v2 = vld [vmem:[#allocation5] sm:$0xff]   ;;  %v990_v3 = vld [vmem:[#allocation5 + $0x8] sm:$0xff]  }
  0x86   : > { %848 = vmatprep.subr.bf16.mxu0 %v1213_v0  ;;  %864 = vmatprep.mubr.msk.bf16.mxu0 %vm1214_vm0, %v1213_v0  ;;  %v991_v5 = vld [vmem:[#allocation5 + $0x10] sm:$0xff]   ;;  %v992_v8 = vld [vmem:[#allocation5 + $0x18] sm:$0xff]   ;;  %v993_v10 = vld [vmem:[#allocation5 + $0x20] sm:$0xff]   ;;  %s818_s7 = sshll.u32 %s1272_s25, 7  ;;  %s310_s10 = scalar_lea.vmem [#allocation10], %s786_s13 }
  0x87   : > { %868 = vmatprep.subr.bf16.mxu1 %v1213_v0  ;;  %884 = vmatprep.mubr.msk.bf16.mxu1 %vm1214_vm0, %v1213_v0  ;;  %v315_v4 = vshrl.u32 %v314_v1, 7  ;;  %v312_v7 = vld [vmem:[%s270_s12] sm:$0xff]  ;;  %v994_v12 = vld [vmem:[#allocation5 + $0x28] sm:$0xff]   ;;  %v1005_v14 = vld [vmem:[#allocation7] sm:$0xff]   ;;  %s678_s30 = sshll.u32 %s310_s10, 4  ;;  %s1510_s20 = scalar_lea.hbm %s1560_s6, %s818_s7  ;;  %s1512_s30 = int_to_ptr.vmem [resolvable:$true] %s678_s30 }
  0x88   : > { %849 = vmatpush3.bf16.msra.mxu0 %v989_v2  ;;  %v313_v9 = vrot.slane %v312_v7, 7  ;;  %v791_v15 = vld [vmem:[%s1555_s1] ss:$0 sm:$0xff]  ;;  %869 = vmatpush3.bf16.msra.mxu1 %v1005_v14  ;;  %v1006_v16 = vld [vmem:[#allocation7 + $0x8] sm:$0xff]   ;;  %v996_v21 = vld [vmem:[#allocation5 + $0x38] sm:$0xff]   ;;  %s665_s25 = scalar_lea.sflag [#allocation4], %s1450_s11 }
  0x89   : > { %850 = vmatprep.subr.bf16.mxu0 %v1213_v0  ;;  %v316_v6 = vand.u32 7, %v315_v4  ;;  %870 = vmatprep.subr.bf16.mxu1 %v1213_v0  ;;  %v995_v17 = vld [vmem:[#allocation5 + $0x30] sm:$0xff]   ;;  %v1008_v22 = vld [vmem:[#allocation7 + $0x18] sm:$0xff]   ;;  %v997_v24 = vld [vmem:[#allocation8] sm:$0xff]   ;;  %s1131_s8 = scalar_lea.vmem %s1512_s30, 128  ;;  %s1215_s13 = smov [#allocation10]  }
  0x8a   : > { %v1007_v19 = vld [vmem:[#allocation7 + $0x10] sm:$0xff]   ;;  %v1009_v25 = vld [vmem:[#allocation7 + $0x20] sm:$0xff]   ;;  %v998_v26 = vld [vmem:[#allocation8 + $0x8] sm:$0xff]   ;;  %p1132_p10 = scmp.ne.s32.totalorder %s1512_s30, %s1131_s8  ;;  %s1135_s17 = sshll.u32 %s1215_s13, 4  ;;  %s1136_s17 = int_to_ptr.vmem [resolvable:$false] %s1135_s17 }
  0x8b   : > { %vm317_vm1 = vcmp.eq.s32.totalorder %v316_v6, 0  ;;  %v1010_v27 = vld [vmem:[#allocation7 + $0x28] sm:$0xff]   ;;  %v999_v28 = vld [vmem:[#allocation8 + $0x10] sm:$0xff]   ;;  %v1000_v29 = vld [vmem:[#allocation8 + $0x18] sm:$0xff]   ;;  %s1137_s12 = scalar_lea.vmem %s1136_s17, 256  ;;  %p1138_p12 = scmp.lt.s32.totalorder %s1512_s30, %s1136_s17 }
  0x8c   : > { %851 = vmatpush3.bf16.msra.mxu0 %v990_v3  ;;  %v320_v11 = vsel %vm317_vm1, 0.0, %v313_v9  ;;  %871 = vmatpush3.bf16.msra.mxu1 %v1006_v16  ;;  %v1001_v30 = vld [vmem:[#allocation8 + $0x20] sm:$0xff]   ;;  %v1002_v31 = vld [vmem:[#allocation8 + $0x28] sm:$0xff]   ;;  %v792_v32 = vld [vmem:[%s1556_s2] ss:$0 sm:$0xff]  ;;  %p1133_p3 = pnand %p1132_p10, %p1405_p5  ;;  %p1139_p1 = scmp.lt.s32.totalorder %s1137_s12, %s1131_s8 }
  0x8d   : > { %852 = vmatprep.subr.bf16.mxu0 %v1213_v0  ;;  %v321_v13 = vsub.f32 %v312_v7, %v320_v11  ;;  %872 = vmatprep.subr.bf16.mxu1 %v1213_v0  ;;  %v1003_v34 = vld [vmem:[#allocation8 + $0x30] sm:$0xff]   ;;  %v1004_v36 = vld [vmem:[#allocation8 + $0x38] sm:$0xff]  }
  0x8e   : > { %v1011_v38 = vld [vmem:[#allocation7 + $0x30] sm:$0xff]   ;;  %v1012_v39 = vld [vmem:[#allocation7 + $0x38] sm:$0xff]   ;;  %p1134_p7 = pneg %p1133_p3  ;;  %p1140_p2 = por %p1139_p1, %p1138_p12 }
  0x8f   : > { %v330_v18 = vmul.f32 %v791_v15, %v321_v13  ;;  %v339_v33 = vmul.f32 %v792_v32, %v321_v13 }
  0x90   : > { %853 = vmatpush3.bf16.msra.mxu0 %v991_v5  ;;  %873 = vmatpush3.bf16.msra.mxu1 %v1007_v19  ;;  %p1141_p4 = pnand %p1140_p2, %p1134_p7 }
  0x91   : > { %854 = vmatprep.subr.bf16.mxu0 %v1213_v0  ;;  %v331_v20 = vadd.f32 %v330_v18, %v320_v11  ;;  %874 = vmatprep.subr.bf16.mxu1 %v1213_v0  ;;  %v340_v35 = vadd.f32 %v339_v33, %v320_v11 }
  0x93   : > { %v332_v23 = vpack.c.bf16 %v331_v20, %v331_v20  ;;  %v341_v37 = vpack.c.bf16 %v340_v35, %v340_v35 }
  0x94   : > { %855 = vmatpush3.bf16.msra.mxu0 %v992_v8  ;;  %875 = vmatpush3.bf16.msra.mxu1 %v1008_v22 }
  0x95   : > { %856 = vmatprep.subr.bf16.mxu0 %v1213_v0  ;;  %876 = vmatprep.subr.bf16.mxu1 %v1213_v0 }
  0x98   : > { %857 = vmatpush3.bf16.msra.mxu0 %v993_v10  ;;  %877 = vmatpush3.bf16.msra.mxu1 %v1009_v25 }
  0x99   : > { %858 = vmatprep.subr.bf16.mxu0 %v1213_v0  ;;  %878 = vmatprep.subr.bf16.mxu1 %v1213_v0 }
  0x9c   : > { %859 = vmatpush3.bf16.msra.mxu0 %v994_v12  ;;  %879 = vmatpush3.bf16.msra.mxu1 %v1010_v27 }
  0x9d   : > { %860 = vmatprep.subr.bf16.mxu0 %v1213_v0  ;;  %880 = vmatprep.subr.bf16.mxu1 %v1213_v0 }
  0xa0   : > { %861 = vmatpush3.bf16.msra.mxu0 %v995_v17  ;;  %881 = vmatpush3.bf16.msra.mxu1 %v1011_v38 }
  0xa1   : > { %862 = vmatprep.subr.bf16.mxu0 %v1213_v0  ;;  %882 = vmatprep.subr.bf16.mxu1 %v1213_v0 }
  0xa4   : > { %863 = vmatpush3.bf16.msra.mxu0 %v996_v21  ;;  %883 = vmatpush3.bf16.msra.mxu1 %v1012_v39 }
  0xa5   : > { %888 = vmatprep.subr.bf16.mxu0 %v1213_v0 }
  0xa7   : > { %865 = vmatmul.mubr.bf16.vlgmr.msra.gmra.mrb[0].mxu0 %v332_v23 }
  0xa8   : > { %889 = vmatpush3.bf16.msra.mxu0 %v997_v24  ;;  %904 = vmatprep.mubr.msk.bf16.mxu0 %vm1214_vm0, %v1213_v0 }
  0xa9   : > { %890 = vmatprep.subr.bf16.mxu0 %v1213_v0 }
  0xac   : > { %891 = vmatpush3.bf16.msra.mxu0 %v998_v26 }
  0xad   : > { %892 = vmatprep.subr.bf16.mxu0 %v1213_v0 }
  0xb0   : > { %893 = vmatpush3.bf16.msra.mxu0 %v999_v28 }
  0xb1   : > { %894 = vmatprep.subr.bf16.mxu0 %v1213_v0 }
  0xb4   : > { %895 = vmatpush3.bf16.msra.mxu0 %v1000_v29 }
  0xb5   : > { %896 = vmatprep.subr.bf16.mxu0 %v1213_v0 }
  0xb8   : > { %897 = vmatpush3.bf16.msra.mxu0 %v1001_v30 }
  0xb9   : > { %898 = vmatprep.subr.bf16.mxu0 %v1213_v0 }
  0xbc   : > { %899 = vmatpush3.bf16.msra.mxu0 %v1002_v31 }
  0xbd   : > { %900 = vmatprep.subr.bf16.mxu0 %v1213_v0 }
  0xc0   : > { %901 = vmatpush3.bf16.msra.mxu0 %v1003_v34 }
  0xc1   : > { %902 = vmatprep.subr.bf16.mxu0 %v1213_v0 }
  0xc4   : > { %903 = vmatpush3.bf16.msra.mxu0 %v1004_v36 }
  0xc7   : > { %905 = vmatmul.mubr.bf16.vlgmr.msra.gmra.mrb[4].mxu0 %v341_v37 }
 0x17a   : > { %v440_v40 = vpop.f32.mrb[0].mxu0 }
 0x17b   : > { %v446_v41 = vmax.f32 %v440_v40, 0.0  ;;  %v866_v42 = vpop.f32.mrb[1].mxu0 }
 0x17c   : > { %v443_v43 = vpop.f32.mrb[2].mxu0 }
 0x17d   : > { %v447_v44 = vmul.f32 %v446_v41, %v446_v41  ;;  %v867_v45 = vpop.f32.mrb[3].mxu0 }
 0x17f   : > { %v448_v46 = vpack.c.bf16 %v447_v44, %v447_v44 }
 0x181   : > { %885 = vmatmul.mubr.bf16.vlgmr.msra.gmra.mrb[0].mxu1 %v448_v46 }
 0x19a   : > { %v651_v47 = vpop.f32.mrb[4].mxu0 }
 0x19b   : > { %v906_v48 = vpop.f32.mrb[5].mxu0  ;;  %v657_v51 = vsub.f32 0.0, %v651_v47 }
 0x19c   : > { %v654_v49 = vpop.f32.mrb[6].mxu0 }
 0x19d   : > { %v907_v50 = vpop.f32.mrb[7].mxu0  ;;  %v658_v52 = vmul.f32 1.442695, %v657_v51 }
 0x19f   : > { %1013 = vpow2.f32 %v658_v52 }
 0x1a9   : > { %v1014_v53 = vpop.eup %1013 }
 0x1aa   : > { %v660_v54 = vadd.f32 1.0, %v1014_v53 }
 0x1ac   : > { %1015 = vrcp.f32 %v660_v54 }
 0x1b6   : > { %v1016_v55 = vpop.eup %1015 }
 0x254   : > { %v547_v56 = vpop.f32.mrb[0].mxu1 }
 0x255   : > { %v662_v57 = vmul.f32 %v1016_v55, %v547_v56  ;;  %v886_v58 = vpop.f32.mrb[1].mxu1 }
 0x256   : > { %v550_v59 = vpop.f32.mrb[2].mxu1 }
 0x257   : > { %663 = vst [vmem:[%s310_s10] sm:$0xff] %v662_v57  ;;  %v887_v60 = vpop.f32.mrb[3].mxu1 }
 0x258   : > { %1144 = shalt.err (!%p1141_p4)
}
 0x259   : > { %s1145_s11 = scalar_lea.hbm %s1510_s20, 128  ;;  %s1149_s19 = scalar_lea.hbm %s1560_s6, 256 }
 0x25a   : > { %p1146_p0 = scmp.ne.s32.totalorder %s1510_s20, %s1145_s11  ;;  %p1150_p8 = scmp.lt.u32.totalorder %s1510_s20, %s1560_s6 }
 0x25b   : > { %p1151_p13 = scmp.lt.u32.totalorder %s1149_s19, %s1145_s11  ;;  %p1153_p10 = scmp.lt.u32.totalorder %s1145_s11, %s1510_s20 }
 0x25c   : > { %p1147_p9 = pnand %p1146_p0, %p1405_p5 }
 0x25d   : > { %p1152_p6 = por %p1151_p13, %p1150_p8 }
 0x25e   : > { %p1148_p11 = pneg %p1147_p9 }
 0x25f   : > { %p1154_p3 = por %p1153_p10, %p1152_p6 }
 0x261   : > { %p1155_p7 = pnand %p1154_p3, %p1148_p11 }
 0x263   : > { %1158 = shalt.err (!%p1155_p7)
}
 0x264   : > { %922 = dma.vmem_to_hbm [thread:$0]  (%p1405_p5), %s1512_s30, 128, %s1510_s20, %s665_s25  }
 0x265 PF: > { %s690_s10 = sand.u32 1, %s1193_s21   ;;  %p1578_p12 = scmp.ne.s32.totalorder %s1565_s28, 0 }
 0x266   : > { %p1579_p1 = scmp.ge.s32.totalorder %s1205_s24, 2  ;;  %s691_s16 = scalar_lea.sflag [#allocation4], %s690_s10 }
 0x268   : > { %p939_p2 = pnand %p1579_p1, %p1578_p12 }
 0x26a   : > { %1188 = dma.done.wait (!%p939_p2), %s691_s16, 128  }
 0x26b   : > { %1190 = vsyncadd (!%p939_p2), %s691_s16, 4294967168  ;;  %p21_p4 = scmp.ge.s32.totalorder %s1391_s18, 4   ;;  %s1580_s21 = smov %s1197_s22 }
 0x26c   : > { %s1581_s22 = smov %s1201_s23  ;;  %s1582_s23 = smov %s1401_s14 }
 0x26d   : > { %s1583_s24 = smov %s1391_s18  ;;  %23 = sbr.rel (!%p21_p4) target bundleno = 7 (0x7), region = 101 }
 0x274   :  { %696 = vsyncpa [#allocation3], 1 }
 0x275   :  { %698 = vsyncpa [#allocation3 + $0x1], 1 }
 0x276   :  { %699 = vsyncpa [#allocation6], 1 }
 0x277   :  { %700 = vsyncpa [#allocation9], 1 }
 0x278   :  { %701 = vsyncpa [#allocation4], 1 }
 0x279   :  { %703 = vsyncpa [#allocation4 + $0x1], 1 }

</bundles_post_ra>
